<compile_context>
chip_gen: v7x
topology: tpu7x:2x2x1
jax: 0.10.0
libtpu: 0.0.40
codegen_flags: <defaults>
</compile_context>

<pallas_src>
import jax
import jax.numpy as jnp
from jax.experimental import pallas as pl
from jax.experimental.pallas import tpu as pltpu

_LANE = 128


def _round_up(n, m):
    return ((n + m - 1) // m) * m


def _mlp_kernel(x_ref, w1_ref, b1_ref, w2_ref, b2_ref, w3_ref, b3_ref, o_ref,
                *, precision=None):
    # fc1 + relu (MXU matmul, f32 accumulate; bias/ReLU in f32 on the VPU)
    h1 = jnp.dot(x_ref[...], w1_ref[...],
                 preferred_element_type=jnp.float32, precision=precision)
    h1 = jnp.maximum(h1 + b1_ref[...], 0.0)
    # fc2 + relu
    h2 = jnp.dot(h1.astype(w2_ref.dtype), w2_ref[...],
                 preferred_element_type=jnp.float32, precision=precision)
    h2 = jnp.maximum(h2 + b2_ref[...], 0.0)
    # fc3 (logits, no activation)
    out = jnp.dot(h2.astype(w3_ref.dtype), w3_ref[...],
                  preferred_element_type=jnp.float32, precision=precision)
    o_ref[...] = (out + b3_ref[...]).astype(o_ref.dtype)


def enhanced_classifier_forward(x, params, *, tile_b=4096, precision=None):
    """Forward pass of EnhancedClassifier.

    x: (B, D) activations. For the reduced-HBM-bandwidth path, pass x already
       in bf16 (the wrapper never casts x; a wrapper-side astype would add an
       extra HBM pass and erase the saving).
    params: dict of w1,b1,w2,b2,w3,b3 — weights (in, out), biases (1, out), f32.
    precision: optional lax.Precision for the matmuls (e.g. HIGHEST if a
       bit-accurate f32 reference match is required; cheap, kernel is
       memory-bound).
    """
    B, D = x.shape
    w1, b1 = params["w1"], params["b1"]
    w2, b2 = params["w2"], params["b2"]
    w3, b3 = params["w3"], params["b3"]
    out_dim = w3.shape[1]

    # Weights are tiny and VMEM-resident: casting them to the activation dtype
    # is free; biases stay f32 (bias add / ReLU run in f32 after f32 MXU acc).
    if w1.dtype != x.dtype:
        w1 = w1.astype(x.dtype)
        w2 = w2.astype(x.dtype)
        w3 = w3.astype(x.dtype)

    itemsize = jnp.dtype(x.dtype).itemsize
    sublane = 8 if itemsize >= 4 else (16 if itemsize == 2 else 32)

    # Batch tile: large enough (2-4 MiB of x) to amortize the ~0.35 us
    # per-grid-step overhead against the HBM roofline.
    tb = min(int(tile_b), _round_up(B, sublane))
    # Guarantee >= 2 grid steps when possible so a megacore chip (v7x, 2 TCs)
    # can shard the "parallel" batch axis across both cores; on single-TC
    # chips this costs at most one extra step of overhead.
    if B > sublane:
        tb = min(tb, _round_up(pl.cdiv(B, 2), sublane))
    tb = max(sublane, _round_up(tb, sublane))
    grid = (pl.cdiv(B, tb),)

    # Explicit VMEM budget from the tile math (instead of per-generation
    # scoped defaults): double-buffered x, double-buffered lane-padded out,
    # lane-padded f32 h1/h2/out intermediates, resident weights, + headroom.
    x_tile_bytes = tb * _round_up(D, _LANE) * itemsize
    out_tile_bytes = tb * _round_up(out_dim, _LANE) * 4
    inter_bytes = 3 * tb * _LANE * 4
    weight_bytes = sum(a.size * a.dtype.itemsize
                       for a in (w1, b1, w2, b2, w3, b3))
    vmem_est = 2 * x_tile_bytes + 2 * out_tile_bytes + inter_bytes + weight_bytes
    vmem_limit = min(int(vmem_est * 1.5) + (2 << 20), 64 << 20)

    # Resident (constant index_map) specs for the tiny weights/biases.
    def const(_i):
        return (0, 0)

    x_spec = pl.BlockSpec((tb, D), lambda i: (i, 0))
    o_spec = pl.BlockSpec((tb, out_dim), lambda i: (i, 0))
    w_specs = [
        pl.BlockSpec(w1.shape, const), pl.BlockSpec(b1.shape, const),
        pl.BlockSpec(w2.shape, const), pl.BlockSpec(b2.shape, const),
        pl.BlockSpec(w3.shape, const), pl.BlockSpec(b3.shape, const),
    ]

    d1, d2, d3 = w1.shape[1], w2.shape[1], w3.shape[1]
    flops = 2 * B * (D * d1 + d1 * d2 + d2 * d3)
    bytes_accessed = (
        x.size * x.dtype.itemsize
        + sum(a.size * a.dtype.itemsize for a in (w1, b1, w2, b2, w3, b3))
        + B * out_dim * 4
    )

    kernel = lambda *refs: _mlp_kernel(*refs, precision=precision)

    return pl.pallas_call(
        kernel,
        out_shape=jax.ShapeDtypeStruct((B, out_dim), jnp.float32),
        grid=grid,
        in_specs=[x_spec] + w_specs,
        out_specs=o_spec,
        compiler_params=pltpu.CompilerParams(
            dimension_semantics=("parallel",),
            vmem_limit_bytes=vmem_limit),
        cost_estimate=pl.CostEstimate(
            flops=flops, transcendentals=0, bytes_accessed=bytes_accessed),
    )(x, w1, b1, w2, b2, w3, b3)


def init_params(key, embedding_dim=128):
    """Deterministic PyTorch-style uniform(-1/sqrt(fan_in), 1/sqrt(fan_in)) init."""
    d1 = embedding_dim
    d2 = embedding_dim // 4
    d3 = embedding_dim // 8
    d4 = 2
    keys = jax.random.split(key, 6)

    def lin(kw, kb, fan_in, fan_out):
        bound = 1.0 / jnp.sqrt(fan_in)
        w = jax.random.uniform(kw, (fan_in, fan_out), jnp.float32, -bound, bound)
        b = jax.random.uniform(kb, (1, fan_out), jnp.float32, -bound, bound)
        return w, b

    w1, b1 = lin(keys[0], keys[1], d1, d2)
    w2, b2 = lin(keys[2], keys[3], d2, d3)
    w3, b3 = lin(keys[4], keys[5], d3, d4)
    return {"w1": w1, "b1": b1, "w2": w2, "b2": b2, "w3": w3, "b3": b3}


def _reference_forward(x, p):
    h1 = jnp.maximum(x @ p["w1"] + p["b1"], 0.0)
    h2 = jnp.maximum(h1 @ p["w2"] + p["b2"], 0.0)
    return h2 @ p["w3"] + p["b3"]


if __name__ == "__main__":
    key = jax.random.PRNGKey(0)
    k_x, k_x2, k_p = jax.random.split(key, 3)

    embedding_dim = 128
    params = init_params(k_p, embedding_dim)

    # Small-shape exact check (f32 path, single block).
    batch = 8
    x = jax.random.normal(k_x, (batch, embedding_dim), jnp.float32)
    out = jax.block_until_ready(enhanced_classifier_forward(x, params))
    ref = _reference_forward(x, params)
    assert out.shape == (batch, 2), out.shape
    assert jnp.allclose(out, ref, atol=1e-5, rtol=1e-5), "mismatch vs reference (f32)"

    # Multi-block + tail check (small tile forces a multi-step grid, last block
    # padded by Pallas).
    batch2 = 520
    x2 = jax.random.normal(k_x2, (batch2, embedding_dim), jnp.float32)
    out2 = jax.block_until_ready(
        enhanced_classifier_forward(x2, params, tile_b=256))
    ref2 = _reference_forward(x2, params)
    assert out2.shape == (batch2, 2), out2.shape
    assert jnp.allclose(out2, ref2, atol=1e-5, rtol=1e-5), "mismatch vs reference (tiled)"

    # Default-tile path (>= 2 grid steps so a v7x megacore splits the batch).
    out2b = jax.block_until_ready(enhanced_classifier_forward(x2, params))
    assert jnp.allclose(out2b, ref2, atol=1e-5, rtol=1e-5), "mismatch vs reference (default tile)"

    # bf16 bandwidth path: x is supplied already in bf16 (producer-side cast),
    # the wrapper never re-casts it; loose tolerance, accumulation stays f32.
    x2_bf16 = x2.astype(jnp.bfloat16)
    out_bf16 = jax.block_until_ready(
        enhanced_classifier_forward(x2_bf16, params, tile_b=256))
    assert out_bf16.shape == (batch2, 2), out_bf16.shape
    assert jnp.allclose(out_bf16, ref2, atol=0.15, rtol=0.1), "mismatch vs reference (bf16)"

    print("KERNEL_OK")
</pallas_src>

<mosaic_0001>
module attributes {stable_mosaic.version = 11 : i64} {
  func.func @_lambda_(%arg0: i32, %arg1: memref<8x128xf32, #tpu.memory_space<vmem>>, %arg2: memref<128x32xf32, #tpu.memory_space<vmem>>, %arg3: memref<1x32xf32, #tpu.memory_space<vmem>>, %arg4: memref<32x16xf32, #tpu.memory_space<vmem>>, %arg5: memref<1x16xf32, #tpu.memory_space<vmem>>, %arg6: memref<16x2xf32, #tpu.memory_space<vmem>>, %arg7: memref<1x2xf32, #tpu.memory_space<vmem>>, %arg8: memref<8x2xf32, #tpu.memory_space<vmem>>) attributes {dimension_semantics = [#tpu.dimension_semantics<parallel>], iteration_bounds = array<i64: 1>, scalar_prefetch = 0 : i64, scratch_operands = 0 : i64, tpu.core_type = #tpu.core_type<tc>, window_params = [{transform_indices = @transform_0, window_bounds = array<i64: 8, 128>}, {pipeline_mode = #tpu.pipeline_mode<synchronous>, transform_indices = @transform_1, window_bounds = array<i64: 128, 32>}, {pipeline_mode = #tpu.pipeline_mode<synchronous>, transform_indices = @transform_2, window_bounds = array<i64: 1, 32>}, {pipeline_mode = #tpu.pipeline_mode<synchronous>, transform_indices = @transform_3, window_bounds = array<i64: 32, 16>}, {pipeline_mode = #tpu.pipeline_mode<synchronous>, transform_indices = @transform_4, window_bounds = array<i64: 1, 16>}, {pipeline_mode = #tpu.pipeline_mode<synchronous>, transform_indices = @transform_5, window_bounds = array<i64: 16, 2>}, {pipeline_mode = #tpu.pipeline_mode<synchronous>, transform_indices = @transform_6, window_bounds = array<i64: 1, 2>}, {transform_indices = @transform_7, window_bounds = array<i64: 8, 2>}]} {
    %c0 = arith.constant 0 : index
    %c0_0 = arith.constant 0 : index
    %0 = vector.load %arg1[%c0, %c0_0] : memref<8x128xf32, #tpu.memory_space<vmem>>, vector<8x128xf32>
    %c0_1 = arith.constant 0 : index
    %c0_2 = arith.constant 0 : index
    %1 = vector.load %arg2[%c0_1, %c0_2] : memref<128x32xf32, #tpu.memory_space<vmem>>, vector<128x32xf32>
    %cst = arith.constant dense<0.000000e+00> : vector<8x32xf32>
    %2 = tpu.matmul %0, %1, %cst {dimension_numbers = #tpu.dot_dimension_numbers<[1], [0], [0], [1], [0, 0, 1, 1], [], []>} : vector<8x128xf32>, vector<128x32xf32>, vector<8x32xf32> -> vector<8x32xf32>
    %c0_3 = arith.constant 0 : index
    %c0_4 = arith.constant 0 : index
    %3 = vector.load %arg3[%c0_3, %c0_4] : memref<1x32xf32, #tpu.memory_space<vmem>>, vector<1x32xf32>
    %4 = vector.broadcast %3 : vector<1x32xf32> to vector<8x32xf32>
    %5 = arith.addf %2, %4 : vector<8x32xf32>
    %cst_5 = arith.constant 0.000000e+00 : f32
    %6 = vector.broadcast %cst_5 : f32 to vector<8x32xf32>
    %7 = arith.maximumf %5, %6 : vector<8x32xf32>
    %c0_6 = arith.constant 0 : index
    %c0_7 = arith.constant 0 : index
    %8 = vector.load %arg4[%c0_6, %c0_7] : memref<32x16xf32, #tpu.memory_space<vmem>>, vector<32x16xf32>
    %cst_8 = arith.constant dense<0.000000e+00> : vector<8x16xf32>
    %9 = tpu.matmul %7, %8, %cst_8 {dimension_numbers = #tpu.dot_dimension_numbers<[1], [0], [0], [1], [0, 0, 1, 1], [], []>} : vector<8x32xf32>, vector<32x16xf32>, vector<8x16xf32> -> vector<8x16xf32>
    %c0_9 = arith.constant 0 : index
    %c0_10 = arith.constant 0 : index
    %10 = vector.load %arg5[%c0_9, %c0_10] : memref<1x16xf32, #tpu.memory_space<vmem>>, vector<1x16xf32>
    %11 = vector.broadcast %10 : vector<1x16xf32> to vector<8x16xf32>
    %12 = arith.addf %9, %11 : vector<8x16xf32>
    %cst_11 = arith.constant 0.000000e+00 : f32
    %13 = vector.broadcast %cst_11 : f32 to vector<8x16xf32>
    %14 = arith.maximumf %12, %13 : vector<8x16xf32>
    %c0_12 = arith.constant 0 : index
    %c0_13 = arith.constant 0 : index
    %15 = vector.load %arg6[%c0_12, %c0_13] : memref<16x2xf32, #tpu.memory_space<vmem>>, vector<16x2xf32>
    %cst_14 = arith.constant dense<0.000000e+00> : vector<8x2xf32>
    %16 = tpu.matmul %14, %15, %cst_14 {dimension_numbers = #tpu.dot_dimension_numbers<[1], [0], [0], [1], [0, 0, 1, 1], [], []>} : vector<8x16xf32>, vector<16x2xf32>, vector<8x2xf32> -> vector<8x2xf32>
    %c0_15 = arith.constant 0 : index
    %c0_16 = arith.constant 0 : index
    %17 = vector.load %arg7[%c0_15, %c0_16] : memref<1x2xf32, #tpu.memory_space<vmem>>, vector<1x2xf32>
    %18 = vector.broadcast %17 : vector<1x2xf32> to vector<8x2xf32>
    %19 = arith.addf %16, %18 : vector<8x2xf32>
    %c0_17 = arith.constant 0 : index
    %c0_18 = arith.constant 0 : index
    %20 = vector.load %arg8[%c0_17, %c0_18] : memref<8x2xf32, #tpu.memory_space<vmem>>, vector<8x2xf32>
    tpu.vector_store %arg8[%c0_17, %c0_18], %19 {strides = array<i32>} : memref<8x2xf32, #tpu.memory_space<vmem>>, vector<8x2xf32>,
    return
  }
  func.func @transform_0(%arg0: i32) -> (i32, i32) {
    %c0_i32 = arith.constant 0 : i32
    %c0_i32_0 = arith.constant 0 : i32
    return %arg0, %c0_i32 : i32, i32
  }
  func.func @transform_1(%arg0: i32) -> (i32, i32) {
    %c0_i32 = arith.constant 0 : i32
    %c0_i32_0 = arith.constant 0 : i32
    %c0_i32_1 = arith.constant 0 : i32
    return %c0_i32, %c0_i32_0 : i32, i32
  }
  func.func @transform_2(%arg0: i32) -> (i32, i32) {
    %c0_i32 = arith.constant 0 : i32
    %c0_i32_0 = arith.constant 0 : i32
    %c0_i32_1 = arith.constant 0 : i32
    return %c0_i32, %c0_i32_0 : i32, i32
  }
  func.func @transform_3(%arg0: i32) -> (i32, i32) {
    %c0_i32 = arith.constant 0 : i32
    %c0_i32_0 = arith.constant 0 : i32
    %c0_i32_1 = arith.constant 0 : i32
    return %c0_i32, %c0_i32_0 : i32, i32
  }
  func.func @transform_4(%arg0: i32) -> (i32, i32) {
    %c0_i32 = arith.constant 0 : i32
    %c0_i32_0 = arith.constant 0 : i32
    %c0_i32_1 = arith.constant 0 : i32
    return %c0_i32, %c0_i32_0 : i32, i32
  }
  func.func @transform_5(%arg0: i32) -> (i32, i32) {
    %c0_i32 = arith.constant 0 : i32
    %c0_i32_0 = arith.constant 0 : i32
    %c0_i32_1 = arith.constant 0 : i32
    return %c0_i32, %c0_i32_0 : i32, i32
  }
  func.func @transform_6(%arg0: i32) -> (i32, i32) {
    %c0_i32 = arith.constant 0 : i32
    %c0_i32_0 = arith.constant 0 : i32
    %c0_i32_1 = arith.constant 0 : i32
    return %c0_i32, %c0_i32_0 : i32, i32
  }
  func.func @transform_7(%arg0: i32) -> (i32, i32) {
    %c0_i32 = arith.constant 0 : i32
    %c0_i32_0 = arith.constant 0 : i32
    return %arg0, %c0_i32 : i32, i32
  }
}

</mosaic_0001>

<bundles_post_ra>
// kernel: tpu_custom_call.1
= control target key start
LH: loop header
LB: loop body
LE: loop exit
PB: predicated region body
PF: predicated region fallthrough
CT: control target
= control target key end

     0   :  { %v415_v0 = vmov 0.0|0.0   ;;  %vm416_vm0 = vmmov 0   ;;  %v417_v4 = vmov 0.0   ;;  %vm132_vm1 = vcmask 261120   ;;  %s542_s1 = inlined_call_operand.vmem [shape: f32[128,32], index: 1, kind: input, shape index: {}]   ;;  %s543_s3 = inlined_call_operand.vmem [shape: f32[32,16], index: 3, kind: input, shape index: {}]   ;;  %s544_s0 = inlined_call_operand.vmem [shape: f32[8,128], index: 0, kind: input, shape index: {}]   ;;  %s545_s2 = inlined_call_operand.vmem [shape: f32[1,32], index: 2, kind: input, shape index: {}]   ;;  %s546_s5 = inlined_call_operand.vmem [shape: f32[16,2], index: 5, kind: input, shape index: {}]   ;;  %s547_s4 = inlined_call_operand.vmem [shape: f32[1,16], index: 4, kind: input, shape index: {}]   ;;  %s548_s6 = inlined_call_operand.vmem [shape: f32[1,2], index: 6, kind: input, shape index: {}]   ;;  %s549_s7 = inlined_call_operand.vmem [shape: f32[8,2], index: 7, kind: output, shape index: {}]  }
   0x1   :  { %379 = vmatprep.subr.bf16.mxu0 %v415_v0  ;;  %v27_v1 = vld [vmem:[%s542_s1] sm:$0xff]  ;;  %v28_v2 = vld [vmem:[%s542_s1 + $0x8] sm:$0xff]  ;;  %v29_v3 = vld [vmem:[%s542_s1 + $0x10] sm:$0xff]  ;;  %358 = vmatprep.mubr.msk.f32.mxu0 %vm416_vm0, %v417_v4  ;;  %vm216_vm2 = vcmask 130048   ;;  %vm290_vm3 = vcmask 15360  }
   0x2   :  { %v380_v5 = vpack.c.bf16 %v28_v2, %v27_v1  ;;  %v30_v6 = vld [vmem:[%s542_s1 + $0x18] sm:$0xff]  ;;  %403 = vmatprep.subr.bf16.mxu1 %v415_v0  ;;  %369 = vmatprep.mubr.msk.f32.mxu1 %vm416_vm0, %v417_v4  ;;  %v31_v8 = vld [vmem:[%s542_s1 + $0x20] sm:$0xff]  ;;  %v32_v9 = vld [vmem:[%s542_s1 + $0x28] sm:$0xff] }
   0x3   :  { %v383_v7 = vpack.c.bf16 %v30_v6, %v29_v3  ;;  %v121_v10 = vld [vmem:[%s543_s3] sm:$0xff]  ;;  %v122_v11 = vld [vmem:[%s543_s3 + $0x8] sm:$0xff]  ;;  %v386_v12 = vpack.c.bf16 %v32_v9, %v31_v8  ;;  %v33_v14 = vld [vmem:[%s542_s1 + $0x30] sm:$0xff] }
   0x4   :  { %381 = vmatpush3.bf16.msra.mxu0 %v380_v5  ;;  %v404_v13 = vpack.c.bf16 %v122_v11, %v121_v10  ;;  %v34_v15 = vld [vmem:[%s542_s1 + $0x38] sm:$0xff]  ;;  %v35_v17 = vld [vmem:[%s542_s1 + $0x40] sm:$0xff]  ;;  %v36_v18 = vld [vmem:[%s542_s1 + $0x48] sm:$0xff] }
   0x5   :  { %382 = vmatprep.subr.bf16.mxu0 %v415_v0  ;;  %v389_v16 = vpack.c.bf16 %v34_v15, %v33_v14  ;;  %v392_v19 = vpack.c.bf16 %v36_v18, %v35_v17  ;;  %v37_v20 = vld [vmem:[%s542_s1 + $0x50] sm:$0xff]  ;;  %v38_v21 = vld [vmem:[%s542_s1 + $0x58] sm:$0xff]  ;;  %v39_v23 = vld [vmem:[%s542_s1 + $0x60] sm:$0xff] }
   0x6   :  { %405 = vmatpush3.bf16.msra.mxu1 %v404_v13  ;;  %v395_v22 = vpack.c.bf16 %v38_v21, %v37_v20  ;;  %v40_v24 = vld [vmem:[%s542_s1 + $0x68] sm:$0xff]  ;;  %v41_v26 = vld [vmem:[%s542_s1 + $0x70] sm:$0xff]  ;;  %v42_v27 = vld [vmem:[%s542_s1 + $0x78] sm:$0xff] }
   0x7   :  { %406 = vmatprep.subr.bf16.mxu1 %v415_v0  ;;  %v398_v25 = vpack.c.bf16 %v40_v24, %v39_v23  ;;  %v401_v28 = vpack.c.bf16 %v42_v27, %v41_v26  ;;  %v26_v29 = vld [vmem:[%s544_s0] sm:$0xff]  ;;  %v123_v30 = vld [vmem:[%s543_s3 + $0x10] sm:$0xff]  ;;  %v124_v31 = vld [vmem:[%s543_s3 + $0x18] sm:$0xff] }
   0x8   :  { %384 = vmatpush3.bf16.msra.mxu0 %v383_v7  ;;  %v407_v32 = vpack.c.bf16 %v124_v31, %v123_v30  ;;  %v296_v33 = vld [vmem:[%s545_s2] ss:$0 sm:$0xff]  ;;  %v208_v39 = vld [vmem:[%s546_s5 + $0x8] sm:$0xff] }
   0x9   :  { %385 = vmatprep.subr.bf16.mxu0 %v415_v0  ;;  %v207_v38 = vld [vmem:[%s546_s5] sm:$0xff] }
   0xa   :  { %408 = vmatpush3.bf16.msra.mxu1 %v407_v32  ;;  %v410_v40 = vpack.c.bf16 %v208_v39, %v207_v38  ;;  %v297_v41 = vld [vmem:[%s547_s4] ss:$0 sm:$0xff] }
   0xb   :  { %409 = vmatprep.subr.bf16.mxu1 %v415_v0  ;;  %v299_v46 = vld [vmem:[%s548_s6] ss:$0 sm:$0xff] }
   0xc   :  { %387 = vmatpush3.bf16.msra.mxu0 %v386_v12 }
   0xd   :  { %388 = vmatprep.subr.bf16.mxu0 %v415_v0 }
  0x10   :  { %390 = vmatpush3.bf16.msra.mxu0 %v389_v16 }
  0x11   :  { %391 = vmatprep.subr.bf16.mxu0 %v415_v0 }
  0x14   :  { %393 = vmatpush3.bf16.msra.mxu0 %v392_v19 }
  0x15   :  { %394 = vmatprep.subr.bf16.mxu0 %v415_v0 }
  0x18   :  { %396 = vmatpush3.bf16.msra.mxu0 %v395_v22 }
  0x19   :  { %397 = vmatprep.subr.bf16.mxu0 %v415_v0 }
  0x1c   :  { %399 = vmatpush3.bf16.msra.mxu0 %v398_v25 }
  0x1d   :  { %400 = vmatprep.subr.bf16.mxu0 %v415_v0 }
  0x20   :  { %402 = vmatpush3.bf16.msra.mxu0 %v401_v28 }
  0x23   :  { %359 = vmatmul.mubr.f32.vlgmr.msra.gmra.mrb[0].mxu0 %v26_v29 }
  0xf6   :  { %v116_v34 = vpop.f32.mrb[0].mxu0 }
  0xf7   :  { %v117_v35 = vadd.f32 %v296_v33, %v116_v34  ;;  %v360_v36 = vpop.f32.mrb[1].mxu0 }
  0xf9   :  { %v120_v37 = vmax.f32 %v117_v35, 0.0 }
  0xfb   :  { %370 = vmatmul.mubr.msk.f32.vlgmr.msra.gmra.mrb[0].mxu1 %vm132_vm1, %v120_v37 }
  0xfc   :  { %376 = vmatprep.mubr.msk.f32.mxu1 %vm416_vm0, %v417_v4  ;;  %411 = vmatpush3.bf16.msra.mxu1 %v410_v40 }
 0x1ce   :  { %v202_v42 = vpop.f32.mrb[0].mxu1 }
 0x1cf   :  { %v203_v43 = vadd.f32 %v297_v41, %v202_v42  ;;  %v371_v44 = vpop.f32.mrb[1].mxu1 }
 0x1d1   :  { %v206_v45 = vmax.f32 %v203_v43, 0.0 }
 0x1d3   :  { %377 = vmatmul.mubr.msk.f32.vlgmr.msra.gmra.mrb[2].mxu1 %vm216_vm2, %v206_v45 }
 0x2a6   :  { %v286_v47 = vpop.f32.mrb[2].mxu1 }
 0x2a7   :  { %v287_v48 = vadd.f32 %v299_v46, %v286_v47  ;;  %v378_v49 = vpop.f32.mrb[3].mxu1 }
 0x2a9   :  { %291 = vst.msk [vmem:[%s549_s7] sm:$0xff] %vm290_vm3, %v287_v48 }

</bundles_post_ra>
